<compile_context>
chip_gen: v7x
topology: tpu7x:2x2x1
jax: 0.10.0
libtpu: 0.0.40
codegen_flags: <defaults>
</compile_context>

<pallas_src>
import functools

import jax
import jax.numpy as jnp
from jax import lax
from jax.experimental import pallas as pl
from jax.experimental.pallas import tpu as pltpu

_MASK_VALUE = -1e30  # finite sentinel (robust vs -inf if padding/segment masks are added)


def _tpu_vmem_capacity_bytes(default=128 * 1024 * 1024):
    try:
        return int(pltpu.get_tpu_info().vmem_capacity_bytes)
    except Exception:  # interpret mode / older runtime: safe default
        return default


def _vmem_limit_bytes():
    cap = _tpu_vmem_capacity_bytes()
    # ~half of physical VMEM: 64 MiB on v5e/v6e (128 MiB), 32 MiB on v7x (64 MiB).
    return max(16 * 1024 * 1024, min(64 * 1024 * 1024, cap // 2))


def _default_blocks():
    cap = _tpu_vmem_capacity_bytes()
    if cap > 64 * 1024 * 1024:        # v5e / v6e: VMEM is not the constraint
        return 256, 512, 512          # block_q, block_k, block_t
    return 256, 256, 256              # v7x: 64 MiB per TC -> keep tiles at 256


def _qkv_proj_kernel(x_ref, w_ref, b_ref, q_ref, k_ref, v_ref, *, num_heads, head_dim):
    """One grid step = one (batch, seq-tile).  qkv = x @ [Wq|Wk|Wv] + [bq|bk|bv].
    Outputs are written head-major (H, Tt, D) so the attention kernel needs no
    wrapper-side transpose (no extra HBM round-trip)."""
    x = x_ref[0]                                                     # (Tt, E) bf16
    y = jnp.dot(x, w_ref[...], preferred_element_type=jnp.float32)  # (Tt, 3E) f32 acc
    y = (y + b_ref[...]).astype(q_ref.dtype)                        # bf16
    tt = y.shape[0]
    e = num_heads * head_dim

    def head_major(lo):
        # (Tt, E) -> (Tt, H, D) -> (H, Tt, D): XLU shuffle, hidden under the MXU matmul.
        part = y[:, lo:lo + e].reshape(tt, num_heads, head_dim)
        return jnp.swapaxes(part, 0, 1)

    q_ref[0] = head_major(0)
    k_ref[0] = head_major(e)
    v_ref[0] = head_major(2 * e)


def _flash_attn_kernel(q_ref, k_ref, v_ref, wp_ref, bp_ref, o_ref,
                       m_ref, l_ref, acc_ref, *, block_q, block_k):
    """Grid = (B, num_q_blocks, num_kv_blocks).  Online-softmax causal attention with
    the output projection fused into the finalize step of the kv axis."""
    qi = pl.program_id(1)
    ki = pl.program_id(2)
    num_kv = pl.num_programs(2)

    first_q = qi * block_q
    last_q = first_q + (block_q - 1)
    first_k = ki * block_k
    last_k = first_k + (block_k - 1)

    @pl.when(ki == 0)
    def _init():
        m_ref[...] = jnp.full(m_ref.shape, _MASK_VALUE, jnp.float32)
        l_ref[...] = jnp.zeros(l_ref.shape, jnp.float32)
        acc_ref[...] = jnp.zeros(acc_ref.shape, jnp.float32)

    def _attend(apply_mask):
        q = q_ref[0]                                                 # (H, Tq, D) bf16
        k = k_ref[0]                                                 # (H, Tk, D) bf16
        v = v_ref[0]                                                 # (H, Tk, D) bf16
        # Scale already folded into Wq/bq.  bf16 MXU inputs, f32 accumulation.
        s = jnp.einsum('hqd,hkd->hqk', q, k,
                       preferred_element_type=jnp.float32)          # (H, Tq, Tk)
        if apply_mask:  # only diagonal-intersecting tiles pay for the mask
            row = first_q + lax.broadcasted_iota(jnp.int32, (block_q, block_k), 0)
            col = first_k + lax.broadcasted_iota(jnp.int32, (block_q, block_k), 1)
            s = jnp.where((col <= row)[None], s, _MASK_VALUE)

        m_prev = m_ref[...]                                          # (H, Tq, 1)
        m_new = jnp.maximum(m_prev, jnp.max(s, axis=-1, keepdims=True))
        alpha = jnp.exp(m_prev - m_new)
        p = jnp.exp(s - m_new)                                       # f32 (v5e: no bf16 EUP)
        l_ref[...] = alpha * l_ref[...] + jnp.sum(p, axis=-1, keepdims=True)
        acc_ref[...] = alpha * acc_ref[...] + jnp.einsum(
            'hqk,hkd->hqd', p.astype(v.dtype), v,
            preferred_element_type=jnp.float32)
        m_ref[...] = m_new

    # Tiles fully below the causal diagonal: no mask needed.
    @pl.when(last_k <= first_q)
    def _no_mask():
        _attend(False)

    # Tiles intersecting the diagonal: some valid and some masked entries.
    @pl.when(jnp.logical_and(first_k <= last_q, last_k > first_q))
    def _masked():
        _attend(True)

    @pl.when(ki == num_kv - 1)
    def _finalize():
        inv_l = pl.reciprocal(l_ref[...], approx=True)               # EUP slot, ~free
        heads = acc_ref[...] * inv_l                                 # (H, Tq, D) f32
        # Single relayout (H,Tq,D)->(Tq,E) instead of an H-way slice+concat, then one
        # lane-dense (Tq,E)@(E,E) MXU matmul (fused output projection).
        e = heads.shape[0] * heads.shape[2]
        cat = jnp.swapaxes(heads, 0, 1).reshape(block_q, e)
        out = jnp.dot(cat.astype(wp_ref.dtype), wp_ref[...],
                      preferred_element_type=jnp.float32) + bp_ref[...]
        o_ref[0] = out.astype(o_ref.dtype)


def multi_head_attention(x, wq, bq, wk, bk, wv, bv, wp_t, bp, *,
                         block_q=None, block_k=None, block_t=None):
    """x: (B, T, E); wq/wk/wv: (H, E, D); bq/bk/bv: (H, D); wp_t: (E, E); bp: (1, E)."""
    B, T, E = x.shape
    H, _, D = wq.shape
    assert H * D == E

    dq, dk, dt = _default_blocks()
    block_q = min(block_q or dq, T)
    block_k = min(block_k or dk, T)
    block_t = min(block_t or dt, T)
    assert T % block_q == 0 and T % block_k == 0 and T % block_t == 0

    # --- trace-time parameter layout plumbing ---
    scale = float(E) ** -0.5            # module scales scores by C**-0.5 (C == E)
    to_full = lambda w: jnp.transpose(w, (1, 0, 2)).reshape(E, H * D)   # (H,E,D)->(E,E)
    # Fold the softmax scale into the Q-side parameters (no per-step score multiply).
    w_qkv = jnp.concatenate([to_full(wq) * scale, to_full(wk), to_full(wv)],
                            axis=1).astype(jnp.bfloat16)                # (E, 3E)
    b_qkv = jnp.concatenate([bq.reshape(-1) * scale, bk.reshape(-1), bv.reshape(-1)]
                            ).reshape(1, 3 * E).astype(jnp.float32)
    x_bf = x.astype(jnp.bfloat16)
    wp_bf = wp_t.astype(jnp.bfloat16)
    bp_f = bp.astype(jnp.float32)

    vmem_limit = _vmem_limit_bytes()

    # --- kernel 1: fused QKV projection, emitting (B, H, T, D) q/k/v directly ---
    qkv_kernel = functools.partial(_qkv_proj_kernel, num_heads=H, head_dim=D)
    hd_shape = jax.ShapeDtypeStruct((B, H, T, D), jnp.bfloat16)
    q, k, v = pl.pallas_call(
        qkv_kernel,
        out_shape=(hd_shape, hd_shape, hd_shape),
        grid_spec=pltpu.PrefetchScalarGridSpec(
            num_scalar_prefetch=0,
            grid=(B, T // block_t),
            in_specs=[
                pl.BlockSpec((1, block_t, E), lambda b, t: (b, t, 0)),
                # Constant-index weight/bias blocks (re-DMA already elided by Pallas).
                # TODO(synk): pipeline_mode=pl.Buffered(1) would drop the second weight
                # buffer too (matters at large E inside v7x's 64 MiB VMEM).
                pl.BlockSpec((E, 3 * E), lambda b, t: (0, 0)),
                pl.BlockSpec((1, 3 * E), lambda b, t: (0, 0)),
            ],
            out_specs=(
                pl.BlockSpec((1, H, block_t, D), lambda b, t: (b, 0, t, 0)),
                pl.BlockSpec((1, H, block_t, D), lambda b, t: (b, 0, t, 0)),
                pl.BlockSpec((1, H, block_t, D), lambda b, t: (b, 0, t, 0)),
            ),
        ),
        compiler_params=pltpu.CompilerParams(
            dimension_semantics=("parallel", "parallel"),
            vmem_limit_bytes=vmem_limit),
    )(x_bf, w_qkv, b_qkv)

    # --- kernel 2: flash attention + fused output projection ---
    attn_kernel = functools.partial(_flash_attn_kernel,
                                    block_q=block_q, block_k=block_k)

    # Clamp k/v index_maps to the causal region: kv steps skipped by the compute guard
    # map to the already-resident block, so Pallas elides their HBM fetch entirely.
    def kv_map(b, i, j):
        last_needed = (i * block_q + block_q - 1) // block_k
        return (b, 0, jnp.minimum(j, last_needed), 0)

    out = pl.pallas_call(
        attn_kernel,
        out_shape=jax.ShapeDtypeStruct((B, T, E), x.dtype),
        grid_spec=pltpu.PrefetchScalarGridSpec(
            num_scalar_prefetch=0,
            grid=(B, T // block_q, T // block_k),
            in_specs=[
                pl.BlockSpec((1, H, block_q, D), lambda b, i, j: (b, 0, i, 0)),  # q
                pl.BlockSpec((1, H, block_k, D), kv_map),                        # k
                pl.BlockSpec((1, H, block_k, D), kv_map),                        # v
                pl.BlockSpec((E, E), lambda b, i, j: (0, 0)),                    # wp_t
                pl.BlockSpec((1, E), lambda b, i, j: (0, 0)),                    # bp
            ],
            out_specs=pl.BlockSpec((1, block_q, E), lambda b, i, j: (b, i, 0)),
            scratch_shapes=[
                pltpu.VMEM((H, block_q, 1), jnp.float32),   # running max m
                pltpu.VMEM((H, block_q, 1), jnp.float32),   # running sum l
                pltpu.VMEM((H, block_q, D), jnp.float32),   # output accumulator
            ],
        ),
        compiler_params=pltpu.CompilerParams(
            dimension_semantics=("parallel", "parallel", "arbitrary"),
            vmem_limit_bytes=vmem_limit),
    )(q, k, v, wp_bf, bp_f)
    return out


def _reference(x, wq, bq, wk, bk, wv, bv, wp_t, bp):
    """Pure-JAX f32 reference mirroring the PyTorch forward (eval mode)."""
    B, T, E = x.shape
    H = wq.shape[0]
    causal = jnp.tril(jnp.ones((T, T), dtype=bool))
    outs = []
    for h in range(H):
        q = x @ wq[h] + bq[h]
        k = x @ wk[h] + bk[h]
        v = x @ wv[h] + bv[h]
        wei = (q @ jnp.swapaxes(k, -2, -1)) * E ** (-0.5)
        wei = jnp.where(causal[None], wei, -jnp.inf)
        wei = jax.nn.softmax(wei, axis=-1)
        outs.append(wei @ v)
    cat = jnp.concatenate(outs, axis=-1)
    return cat @ wp_t + bp


def _make_params(key, num_heads, head_size, num_embeddings):
    ks = jax.random.split(key, 9)

    def init_linear(k, fan_in, shape):
        bound = 1.0 / (fan_in ** 0.5)
        return jax.random.uniform(k, shape, jnp.float32, -bound, bound)

    wq = init_linear(ks[0], num_embeddings, (num_heads, num_embeddings, head_size))
    bq = init_linear(ks[1], num_embeddings, (num_heads, head_size))
    wk = init_linear(ks[2], num_embeddings, (num_heads, num_embeddings, head_size))
    bk = init_linear(ks[3], num_embeddings, (num_heads, head_size))
    wv = init_linear(ks[4], num_embeddings, (num_heads, num_embeddings, head_size))
    bv = init_linear(ks[5], num_embeddings, (num_heads, head_size))
    wp_t = init_linear(ks[6], num_embeddings, (num_embeddings, num_embeddings))
    bp = init_linear(ks[7], num_embeddings, (1, num_embeddings))
    return (wq, bq, wk, bk, wv, bv, wp_t, bp), ks[8]


if __name__ == "__main__":
    num_heads, head_size = 4, 8
    num_embeddings = num_heads * head_size          # 32

    key = jax.random.PRNGKey(0)
    params, key = _make_params(key, num_heads, head_size, num_embeddings)

    # --- test 1: small single-tile case (B=2, T=8) ---
    B, T = 2, 8
    key, sub = jax.random.split(key)
    x = jax.random.normal(sub, (B, T, num_embeddings), jnp.float32)
    out = jax.block_until_ready(multi_head_attention(x, *params))
    ref = _reference(x, *params)
    assert out.shape == (B, T, num_embeddings)
    assert jnp.allclose(out, ref, atol=3e-2, rtol=3e-2), "mismatch vs reference (T=8)"

    # --- test 2: multi-tile causal path with block_q != block_k (exercises the
    #     clamped kv DMA, skipped kv tiles and the mask-free below-diagonal path) ---
    B2, T2 = 2, 512
    key, sub = jax.random.split(key)
    x2 = jax.random.normal(sub, (B2, T2, num_embeddings), jnp.float32)
    out2 = jax.block_until_ready(
        multi_head_attention(x2, *params, block_q=256, block_k=128))
    ref2 = _reference(x2, *params)
    assert out2.shape == (B2, T2, num_embeddings)
    assert jnp.allclose(out2, ref2, atol=5e-2, rtol=5e-2), "mismatch vs reference (T=512)"

    print("KERNEL_OK")
</pallas_src>

<mosaic_0001>
module attributes {stable_mosaic.version = 11 : i64} {
  func.func @_qkv_proj_kernel(%arg0: i32, %arg1: i32, %arg2: memref<1x8x32xbf16, #tpu.memory_space<vmem>>, %arg3: memref<32x96xbf16, #tpu.memory_space<vmem>>, %arg4: memref<1x96xf32, #tpu.memory_space<vmem>>, %arg5: memref<1x4x8x8xbf16, #tpu.memory_space<vmem>>, %arg6: memref<1x4x8x8xbf16, #tpu.memory_space<vmem>>, %arg7: memref<1x4x8x8xbf16, #tpu.memory_space<vmem>>) attributes {dimension_semantics = [#tpu.dimension_semantics<parallel>, #tpu.dimension_semantics<parallel>], iteration_bounds = array<i64: 2, 1>, scalar_prefetch = 0 : i64, scratch_operands = 0 : i64, tpu.core_type = #tpu.core_type<tc>, window_params = [{transform_indices = @transform_0, window_bounds = array<i64: 1, 8, 32>}, {pipeline_mode = #tpu.pipeline_mode<synchronous>, transform_indices = @transform_1, window_bounds = array<i64: 32, 96>}, {pipeline_mode = #tpu.pipeline_mode<synchronous>, transform_indices = @transform_2, window_bounds = array<i64: 1, 96>}, {transform_indices = @transform_3, window_bounds = array<i64: 1, 4, 8, 8>}, {transform_indices = @transform_4, window_bounds = array<i64: 1, 4, 8, 8>}, {transform_indices = @transform_5, window_bounds = array<i64: 1, 4, 8, 8>}]} {
    %c0 = arith.constant 0 : index
    %c0_0 = arith.constant 0 : index
    %c0_1 = arith.constant 0 : index
    %0 = vector.load %arg2[%c0, %c0_0, %c0_1] : memref<1x8x32xbf16, #tpu.memory_space<vmem>>, vector<1x8x32xbf16>
    %1 = vector.shape_cast %0 : vector<1x8x32xbf16> to vector<8x32xbf16>
    %c0_2 = arith.constant 0 : index
    %c0_3 = arith.constant 0 : index
    %2 = vector.load %arg3[%c0_2, %c0_3] : memref<32x96xbf16, #tpu.memory_space<vmem>>, vector<32x96xbf16>
    %cst = arith.constant dense<0.000000e+00> : vector<8x96xf32>
    %3 = tpu.matmul %1, %2, %cst {dimension_numbers = #tpu.dot_dimension_numbers<[1], [0], [0], [1], [0, 0, 1, 1], [], []>} : vector<8x32xbf16>, vector<32x96xbf16>, vector<8x96xf32> -> vector<8x96xf32>
    %c0_4 = arith.constant 0 : index
    %c0_5 = arith.constant 0 : index
    %4 = vector.load %arg4[%c0_4, %c0_5] : memref<1x96xf32, #tpu.memory_space<vmem>>, vector<1x96xf32>
    %5 = vector.broadcast %4 : vector<1x96xf32> to vector<8x96xf32>
    %6 = arith.addf %3, %5 : vector<8x96xf32>
    %7 = arith.truncf %6 : vector<8x96xf32> to vector<8x96xbf16>
    %8 = vector.extract_strided_slice %7 {offsets = [0, 0], sizes = [8, 32], strides = [1, 1]} : vector<8x96xbf16> to vector<8x32xbf16>
    %9 = vector.shape_cast %8 : vector<8x32xbf16> to vector<8x4x8xbf16>
    %10 = tpu.transpose %9, [1, 0, 2] : vector<8x4x8xbf16> -> vector<4x8x8xbf16>
    %c0_6 = arith.constant 0 : index
    %c0_7 = arith.constant 0 : index
    %c0_8 = arith.constant 0 : index
    %c0_9 = arith.constant 0 : index
    %11 = vector.load %arg5[%c0_6, %c0_7, %c0_8, %c0_9] : memref<1x4x8x8xbf16, #tpu.memory_space<vmem>>, vector<1x4x8x8xbf16>
    %12 = vector.shape_cast %11 : vector<1x4x8x8xbf16> to vector<4x8x8xbf16>
    %13 = vector.shape_cast %10 : vector<4x8x8xbf16> to vector<1x4x8x8xbf16>
    tpu.vector_store %arg5[%c0_6, %c0_7, %c0_8, %c0_9], %13 {strides = array<i32>} : memref<1x4x8x8xbf16, #tpu.memory_space<vmem>>, vector<1x4x8x8xbf16>,
    %14 = vector.extract_strided_slice %7 {offsets = [0, 32], sizes = [8, 32], strides = [1, 1]} : vector<8x96xbf16> to vector<8x32xbf16>
    %15 = vector.shape_cast %14 : vector<8x32xbf16> to vector<8x4x8xbf16>
    %16 = tpu.transpose %15, [1, 0, 2] : vector<8x4x8xbf16> -> vector<4x8x8xbf16>
    %c0_10 = arith.constant 0 : index
    %c0_11 = arith.constant 0 : index
    %c0_12 = arith.constant 0 : index
    %c0_13 = arith.constant 0 : index
    %17 = vector.load %arg6[%c0_10, %c0_11, %c0_12, %c0_13] : memref<1x4x8x8xbf16, #tpu.memory_space<vmem>>, vector<1x4x8x8xbf16>
    %18 = vector.shape_cast %17 : vector<1x4x8x8xbf16> to vector<4x8x8xbf16>
    %19 = vector.shape_cast %16 : vector<4x8x8xbf16> to vector<1x4x8x8xbf16>
    tpu.vector_store %arg6[%c0_10, %c0_11, %c0_12, %c0_13], %19 {strides = array<i32>} : memref<1x4x8x8xbf16, #tpu.memory_space<vmem>>, vector<1x4x8x8xbf16>,
    %20 = vector.extract_strided_slice %7 {offsets = [0, 64], sizes = [8, 32], strides = [1, 1]} : vector<8x96xbf16> to vector<8x32xbf16>
    %21 = vector.shape_cast %20 : vector<8x32xbf16> to vector<8x4x8xbf16>
    %22 = tpu.transpose %21, [1, 0, 2] : vector<8x4x8xbf16> -> vector<4x8x8xbf16>
    %c0_14 = arith.constant 0 : index
    %c0_15 = arith.constant 0 : index
    %c0_16 = arith.constant 0 : index
    %c0_17 = arith.constant 0 : index
    %23 = vector.load %arg7[%c0_14, %c0_15, %c0_16, %c0_17] : memref<1x4x8x8xbf16, #tpu.memory_space<vmem>>, vector<1x4x8x8xbf16>
    %24 = vector.shape_cast %23 : vector<1x4x8x8xbf16> to vector<4x8x8xbf16>
    %25 = vector.shape_cast %22 : vector<4x8x8xbf16> to vector<1x4x8x8xbf16>
    tpu.vector_store %arg7[%c0_14, %c0_15, %c0_16, %c0_17], %25 {strides = array<i32>} : memref<1x4x8x8xbf16, #tpu.memory_space<vmem>>, vector<1x4x8x8xbf16>,
    return
  }
  func.func @transform_0(%arg0: i32, %arg1: i32) -> (i32, i32, i32) {
    %c0_i32 = arith.constant 0 : i32
    %c0_i32_0 = arith.constant 0 : i32
    return %arg0, %arg1, %c0_i32 : i32, i32, i32
  }
  func.func @transform_1(%arg0: i32, %arg1: i32) -> (i32, i32) {
    %c0_i32 = arith.constant 0 : i32
    %c0_i32_0 = arith.constant 0 : i32
    %c0_i32_1 = arith.constant 0 : i32
    return %c0_i32, %c0_i32_0 : i32, i32
  }
  func.func @transform_2(%arg0: i32, %arg1: i32) -> (i32, i32) {
    %c0_i32 = arith.constant 0 : i32
    %c0_i32_0 = arith.constant 0 : i32
    %c0_i32_1 = arith.constant 0 : i32
    return %c0_i32, %c0_i32_0 : i32, i32
  }
  func.func @transform_3(%arg0: i32, %arg1: i32) -> (i32, i32, i32, i32) {
    %c0_i32 = arith.constant 0 : i32
    %c0_i32_0 = arith.constant 0 : i32
    %c0_i32_1 = arith.constant 0 : i32
    return %arg0, %c0_i32, %arg1, %c0_i32_0 : i32, i32, i32, i32
  }
  func.func @transform_4(%arg0: i32, %arg1: i32) -> (i32, i32, i32, i32) {
    %c0_i32 = arith.constant 0 : i32
    %c0_i32_0 = arith.constant 0 : i32
    %c0_i32_1 = arith.constant 0 : i32
    return %arg0, %c0_i32, %arg1, %c0_i32_0 : i32, i32, i32, i32
  }
  func.func @transform_5(%arg0: i32, %arg1: i32) -> (i32, i32, i32, i32) {
    %c0_i32 = arith.constant 0 : i32
    %c0_i32_0 = arith.constant 0 : i32
    %c0_i32_1 = arith.constant 0 : i32
    return %arg0, %c0_i32, %arg1, %c0_i32_0 : i32, i32, i32, i32
  }
}

</mosaic_0001>

<bundles_post_ra>
// kernel: tpu_custom_call.1
= control target key start
LH: loop header
LB: loop body
LE: loop exit
PB: predicated region body
PF: predicated region fallthrough
CT: control target
= control target key end

     0   :  { %11 = vsyncpa [#allocation3], 0  ;;  %s1985_s0 = inlined_call_operand.hbm [shape: bf16[2,8,32], index: 0, kind: input, shape index: {}]   ;;  %s1986_s1 = inlined_call_operand.hbm [shape: bf16[32,96], index: 1, kind: input, shape index: {}]   ;;  %s1987_s2 = inlined_call_operand.hbm [shape: f32[1,96], index: 2, kind: input, shape index: {}]   ;;  %s1988_s3 = inlined_call_operand.hbm [shape: bf16[2,4,8,8], index: 3, kind: output, shape index: {0}]   ;;  %s1989_s4 = inlined_call_operand.hbm [shape: bf16[2,4,8,8], index: 4, kind: output, shape index: {1}]   ;;  %s1990_s5 = inlined_call_operand.hbm [shape: bf16[2,4,8,8], index: 5, kind: output, shape index: {2}]  }
   0x1   :  { %13 = vsyncpa [#allocation3 + $0x1], 0 }
   0x2   :  { %14 = vsyncpa [#allocation6], 0 }
   0x3   :  { %15 = vsyncpa [#allocation4], 0 }
   0x4   :  { %17 = vsyncpa [#allocation4 + $0x1], 0 }
   0x5   :  { %18 = vsyncpa [#allocation10], 0 }
   0x6   :  { %20 = vsyncpa [#allocation10 + $0x1], 0  ;;  %s1571_s18 = smov 0   ;;  %s1573_s19 = smov 0  }
   0x7   :  { %s1575_s20 = smov 0   ;;  %s1577_s21 = smov 0  }
   0x8   :  { %s1579_s22 = smov 0   ;;  %s1581_s23 = smov 0  }
   0x9 LB: > { %s1602_s24 = sadd.s32 4294967295, %s1520_s23   ;;  %s1994_s25 = sadd.s32 4294967294, %s1520_s23   ;;  %s1520_s23 = sphi %s1581_s23, %s26_s23   ;;  %s1516_s22 = sphi %s1579_s22, %s2013_s22   ;;  %s1512_s21 = sphi %s1577_s21, %s2012_s21   ;;  %s1508_s20 = sphi %s1575_s20, %s2011_s20   ;;  %s1504_s19 = sphi %s1573_s19, %s2010_s19   ;;  %s1500_s18 = sphi %s1571_s18, %s2009_s18  }
   0xa   : > { %p60_p0 = scmp.ne.s32.totalorder %s1504_s19, %s1500_s18  ;;  %p1991_p1 = scmp.eq.s32.totalorder %s1602_s24, 0 }
   0xb   : > { %p134_p3 = scmp.eq.s32.totalorder %s1994_s25, 1  ;;  %p1138_p5 = scmp.ge.s32.totalorder %s1520_s23, 1 }
   0xc   : > { %p1613_p4 = por %p1991_p1, %p60_p0  ;;  %p197_p7 = scmp.lt.s32.totalorder %s1520_s23, 3 }
   0xd   : > { %p1618_p6 = por %p134_p3, %p60_p0  ;;  %s1522_s29 = smov [#allocation5]  }
   0xe   : > { %s1995_s26 = scalar_select %p1613_p4, 1, 0 }
   0xf   : > { %s1996_s27 = scalar_select %p1618_p6, 1, 0 }
  0x10   : > { %p1623_p8 = pnand %p1138_p5, %p197_p7  ;;  %s209_s30 = sshll.u32 %s1522_s29, 4  ;;  %s1627_s30 = int_to_ptr.vmem [resolvable:$true] %s209_s30 }
  0x11   : > { %s1523_s7 = smov [#allocation7]   ;;  %s1288_s11 = scalar_lea.hbm %s1986_s1, 256 }
  0x12   : > { %p1196_p9 = pneg %p1623_p8  ;;  %s223_s8 = sshll.u32 %s1523_s7, 4  ;;  %s1638_s8 = int_to_ptr.vmem [resolvable:$true] %s223_s8 }
  0x13   : > { %p1289_p12 = scmp.ne.s32.totalorder %s1986_s1, %s1288_s11  ;;  %p1295_p5 = scmp.lt.u32.totalorder %s1288_s11, %s1986_s1 }
  0x14   : > { %p1634_p11 = pnand %p1196_p9, %p1991_p1 }
  0x16   : > { %p1290_p13 = pneg %p1634_p11 }
  0x18   : > { %p1291_p0 = pnand %p1290_p13, %p1289_p12 }
  0x1a   : > { %p1292_p3 = pneg %p1291_p0 }
  0x1c   : > { %p1297_p7 = pnand %p1295_p5, %p1292_p3 }
  0x1e   : > { %1300 = shalt.err (!%p1297_p7)
}
  0x1f   : > { %s1301_s16 = scalar_lea.vmem %s1627_s30, 256  ;;  %p1309_p2 = scmp.lt.s32.totalorder %s1627_s30, %s1627_s30 }
  0x20   : > { %p1302_p9 = scmp.ne.s32.totalorder %s1627_s30, %s1301_s16  ;;  %p1310_p12 = scmp.lt.s32.totalorder %s1301_s16, %s1301_s16 }
  0x22   : > { %p1304_p10 = pnand %p1302_p9, %p1290_p13  ;;  %p1311_p0 = por %p1310_p12, %p1309_p2 }
  0x24   : > { %p1305_p1 = pneg %p1304_p10 }
  0x26   : > { %p1312_p6 = pnand %p1311_p0, %p1305_p1 }
  0x28   : > { %1315 = shalt.err (!%p1312_p6)
}
  0x29   : > { %s1524_s17 = smov 64   ;;  %s1525_s29 = smov 4  }
  0x2a   : > { %1199 = dma.hbm_to_vmem [thread:$0]  (!%p1634_p11), %s1986_s1, 256, %s1627_s30, [#allocation6], %s1524_s17, %s1524_s17, %s1525_s29  }
  0x2b   : > { %s1316_s12 = scalar_lea.hbm %s1987_s2, 16 }
  0x2c   : > { %p1317_p2 = scmp.ne.s32.totalorder %s1987_s2, %s1316_s12  ;;  %p1323_p10 = scmp.lt.u32.totalorder %s1316_s12, %s1987_s2 }
  0x2e   : > { %p1319_p1 = pnand %p1317_p2, %p1290_p13 }
  0x30   : > { %p1320_p6 = pneg %p1319_p1 }
  0x32   : > { %p1325_p3 = pnand %p1323_p10, %p1320_p6 }
  0x34   : > { %1328 = shalt.err (!%p1325_p3)
}
  0x35   : > { %s1329_s30 = scalar_lea.vmem %s1638_s8, 16  ;;  %s1336_s17 = scalar_lea.vmem %s1638_s8, 32 }
  0x36   : > { %p1330_p5 = scmp.ne.s32.totalorder %s1638_s8, %s1329_s30  ;;  %p1337_p12 = scmp.lt.s32.totalorder %s1638_s8, %s1638_s8 }
  0x37   : > { %p1338_p0 = scmp.lt.s32.totalorder %s1336_s17, %s1329_s30 }
  0x38   : > { %p1332_p7 = pnand %p1330_p5, %p1290_p13 }
  0x39   : > { %p1339_p2 = por %p1338_p0, %p1337_p12 }
  0x3a   : > { %p1333_p9 = pneg %p1332_p7 }
  0x3c   : > { %p1340_p1 = pnand %p1339_p2, %p1333_p9 }
  0x3e   : > { %1343 = shalt.err (!%p1340_p1)
}
  0x3f   : > { %1202 = dma.hbm_to_vmem [thread:$0]  (!%p1634_p11), %s1987_s2, 16, %s1638_s8, [#allocation6]  }
  0x40   : > { %s38_s9 = sadd.s32 1, %s1516_s22  ;;  %s47_s10 = sadd.s32 1, %s1508_s20 }
  0x41   : > { %p40_p13 = scmp.ge.s32.totalorder %s38_s9, 2  ;;  %p54_p6 = scmp.ne.s32.totalorder %s1508_s20, %s1504_s19 }
  0x42   : > { %p55_p10 = scmp.eq.s32.totalorder %s1520_s23, 0  ;;  %p1219_p3 = scmp.lt.s32.totalorder %s1520_s23, 2 }
  0x43   : > { %s2015_s9 = smov (%p40_p13, %s38_s9), 0  ;;  %p1999_p7 = scmp.eq.s32.totalorder %s1602_s24, 1 }
  0x44   : > { %p56_p5 = por %p55_p10, %p54_p6  ;;  %s42_s11 = ssub.s32 %s1516_s22, %s2015_s9 }
  0x45   : > { %p1703_p9 = por %p1999_p7, %p54_p6  ;;  %s234_s12 = sand.u32 1, %s1508_s20  }
  0x46   : > { %p45_p12 = scmp.eq.s32.totalorder %s42_s11, 0  ;;  %s1142_s8 = sshll.u32 %s234_s12, 2 }
  0x47   : > { %s2000_s6 = scalar_select %p1703_p9, 1, 0 }
  0x48   : > { %s1143_s13 = sshll.u32 %s1516_s22, 6  ;;  %s238_s17 = scalar_lea.vmem [#allocation2], %s1142_s8 }
  0x49   : > { %s1712_s14 = scalar_select %p45_p12, %s1508_s20, %s47_s10  }
  0x4a   : > { %s1717_s30 = scalar_lea.hbm %s1985_s0, %s1143_s13  ;;  %s246_s29 = sshll.u32 %s238_s17, 4  ;;  %s1725_s29 = int_to_ptr.vmem [resolvable:$true] %s246_s29 }
  0x4b   : > { %p1721_p11 = pnand %p1219_p3, %p56_p5  ;;  %s235_s10 = scalar_lea.sflag [#allocation3], %s234_s12 }
  0x4c   : > { %s1344_s11 = scalar_lea.hbm %s1717_s30, 64  ;;  %s1349_s15 = scalar_lea.hbm %s1985_s0, 128 }
  0x4d   : > { %p1345_p0 = scmp.ne.s32.totalorder %s1717_s30, %s1344_s11  ;;  %p1346_p2 = pneg %p1721_p11 }
  0x4e   : > { %p1350_p6 = scmp.lt.u32.totalorder %s1717_s30, %s1985_s0  ;;  %p1351_p10 = scmp.lt.u32.totalorder %s1349_s15, %s1344_s11 }
  0x4f   : > { %p1347_p1 = pnand %p1346_p2, %p1345_p0  ;;  %p1353_p5 = scmp.lt.u32.totalorder %s1344_s11, %s1717_s30 }
  0x50   : > { %p1352_p3 = por %p1351_p10, %p1350_p6 }
  0x51   : > { %p1348_p13 = pneg %p1347_p1 }
  0x52   : > { %p1354_p7 = por %p1353_p5, %p1352_p3 }
  0x54   : > { %p1355_p12 = pnand %p1354_p7, %p1348_p13 }
  0x56   : > { %1358 = shalt.err (!%p1355_p12)
}
  0x57   : > { %s1359_s12 = scalar_lea.vmem %s1725_s29, 64  ;;  %s1526_s8 = smov [#allocation2]  }
  0x58   : > { %p1360_p0 = scmp.ne.s32.totalorder %s1725_s29, %s1359_s12  ;;  %s1364_s13 = sshll.u32 %s1526_s8, 4  ;;  %s1365_s13 = int_to_ptr.vmem [resolvable:$false] %s1364_s13 }
  0x59   : > { %s1366_s16 = scalar_lea.vmem %s1365_s13, 128  ;;  %p1367_p4 = scmp.lt.s32.totalorder %s1725_s29, %s1365_s13 }
  0x5a   : > { %p1362_p1 = pnand %p1360_p0, %p1346_p2  ;;  %p1368_p6 = scmp.lt.s32.totalorder %s1366_s16, %s1359_s12 }
  0x5c   : > { %p1363_p9 = pneg %p1362_p1  ;;  %p1369_p10 = por %p1368_p6, %p1367_p4 }
  0x5e   : > { %p1370_p3 = pnand %p1369_p10, %p1363_p9 }
  0x60   : > { %1373 = shalt.err (!%p1370_p3)
}
  0x61   : > { %1206 = dma.hbm_to_vmem [thread:$0]  (!%p1721_p11), %s1717_s30, 64, %s1725_s29, %s235_s10  }
  0x62   : > { %255 = sbr.rel (%p1623_p8) target bundleno = 634 (0x27a), region = 32  ;;  %s1755_s11 = sand.u32 (!%p1623_p8), 1, %s1504_s19  }
  0x63   : > { %s1145_s15 = sshll.u32 (!%p1623_p8), %s1755_s11, 2  ;;  %s258_s17 = scalar_lea.sflag (!%p1623_p8), [#allocation3], %s1755_s11 }
  0x64   : > { %s261_s12 = scalar_lea.vmem (!%p1623_p8), [#allocation2], %s1145_s15  ;;  %p2002_p4 = scmp.ne.s32.totalorder (!%p1623_p8), %s1995_s26, 0 }
  0x69   : > { %1483 = dma.done.wait (%p2002_p4), %s258_s17, 64  }
  0x6a   : > { %1485 = vsyncadd (%p2002_p4), %s258_s17, 4294967232  ;;  %p2003_p9 = scmp.eq.s32.totalorder %s1602_s24, 0 }
  0x6c   : > { %1487 = dma.done.wait (%p2003_p9), [#allocation6], 272   ;;  %p2004_p11 = pmov %p2003_p9 }
  0x6d   : > { %v1527_v0 = vmov 0.0   ;;  %vm1528_vm0 = vmmov 0   ;;  %v1286_v1 = vld [vmem:[#allocation5] sm:$0xff]   ;;  %v1287_v2 = vld [vmem:[#allocation5 + $0x8] sm:$0xff]   ;;  %v307_v3 = vld [vmem:[%s261_s12] sm:$0xf]  ;;  %v386_v13 = vlaneseq }
  0x6e   : > { %1489 = vsyncadd (%p2004_p11), [#allocation6], 4294967024  ;;  %1172 = vmatprep.subr.bf16.mxu0 %v1527_v0  ;;  %1176 = vmatprep.mubr.msk.bf16.mxu0 %vm1528_vm0, %v1527_v0  ;;  %vm331_vm1 = vcmask 261120   ;;  %v1151_v4 = vld [vmem:[#allocation7] ss:$0 sm:$0xff]  ;;  %s1529_s26 = smov 104  }
  0x6f   : > { %1173 = vmatpush3.bf16.msra.mxu0 %v1286_v1  ;;  %s1530_s28 = smov 120   ;;  %s1531_s30 = smov 96   ;;  %v1534_v11 = vmov 1983009808   ;;  %v1535_v14 = vmov 1934713408  }
  0x70   : > { %1174 = vmatprep.subr.bf16.mxu0 %v1527_v0  ;;  %s1532_s29 = smov 112   ;;  %s1533_s7 = smov 64   ;;  %v384_v12 = vunpack.c.l.s4 %v1534_v11  ;;  %v401_v15 = vunpack.c.l.s4 %v1535_v14  ;;  %v387_v17 = vshrl.u32 %v386_v13, 7  ;;  %v1536_v34 = vmov 0  }
  0x71   : > { %s1793_s10 = sshll.u32 %s1755_s11, 4  ;;  %vm548_vm2 = vcmask 60416   ;;  %s1801_s13 = sshll.u32 %s1512_s21, 8 }
  0x72   : > { %v385_v16 = vunpack.c.0.s8 %v384_v12  ;;  %v402_v18 = vunpack.c.0.s8 %v401_v15  ;;  %s291_s8 = scalar_lea.vmem [#allocation8], %s1793_s10  ;;  %s1810_s17 = scalar_lea.hbm %s1988_s3, %s1801_s13 }
  0x73   : > { %1175 = vmatpush3.bf16.msra.mxu0 %v1287_v2  ;;  %s934_s12 = sshll.u32 %s291_s8, 4  ;;  %s910_s21 = scalar_lea.sflag [#allocation4], %s1755_s11  ;;  %s1812_s12 = int_to_ptr.vmem [resolvable:$true] %s934_s12 }
  0x74   : > { %v1768_v19 = vsub.s32 %v385_v16, %v387_v17  ;;  %v1771_v23 = vsub.s32 %v402_v18, %v387_v17  ;;  %p2005_p2 = scmp.ne.s32.totalorder %s2000_s6, 0 }
  0x76   : > { %1177 = vmatmul.mubr.msk.bf16.vlgmr.msra.gmra.mrb[0].mxu0 %vm331_vm1, %v307_v3 }
 0x149   : > { %v369_v5 = vpop.f32.mrb[0].mxu0 }
 0x14a   : > { %v370_v6 = vadd.f32 %v1151_v4, %v369_v5  ;;  %v1178_v7 = vpop.f32.mrb[1].mxu0 }
 0x14b   : > { %v372_v8 = vpop.f32.mrb[2].mxu0 }
 0x14c   : > { %v375_v9 = vpack.c.bf16 %v370_v6, %v370_v6  ;;  %v1179_v10 = vpop.f32.mrb[3].mxu0 }
 0x14e   : > { %381 = vrot.lane.b32.xlu1 %v375_v9, %s1529_s26  ;;  %377 = vrot.lane.b32.xlu0 %v375_v9, %s1530_s28  ;;  %v389_v30 = vrot.slane %v375_v9, %v1768_v19  ;;  %s1374_s26 = scalar_lea.vmem %s1812_s12, 256  ;;  %s1537_s28 = smov [#allocation8]  }
 0x14f   : > { %p1375_p8 = scmp.ne.s32.totalorder %s1812_s12, %s1374_s26 }
 0x151   : > { %p1376_p13 = pnand %p1375_p8, %p2005_p2 }
 0x152   : > { %553 = vrot.lane.b32.xlu1 %v375_v9, %s1531_s30  ;;  %379 = vrot.lane.b32.xlu0 %v375_v9, %s1532_s29 }
 0x153   : > { %p1377_p5 = pneg %p1376_p13 }
 0x156   : > { %731 = vrot.lane.b32.xlu1 %v375_v9, %s1533_s7 }
 0x1c0   : > { %v382_v20 = vpop.permute.xlu1 %381  ;;  %v378_v21 = vpop.permute.xlu0 %377 }
 0x1c1   : > { %v431_v22 = vrot.slane %v382_v20, %v1768_v19  ;;  %v423_v24 = vrot.slane %v378_v21, %v1768_v19  ;;  %555 = vrot.lane.b32.xlu0 %v378_v21, %s1531_s30 }
 0x1c3   : > { %v432_v25 = vcombine.low %v423_v24, %v431_v22  ;;  %v433_v26 = vcombine.high %v423_v24, %v431_v22 }
 0x1c4   : > { %v380_v27 = vpop.permute.xlu0 %379 }
 0x1c5   : > { %v440_v28 = vrot.slane %v432_v25, %v1771_v23  ;;  %v397_v29 = vrot.slane %v380_v27, %v1768_v19  ;;  %559 = vrot.lane.b32.xlu0 %v382_v20, %s1531_s30  ;;  %557 = vrot.lane.b32.xlu1 %v380_v27, %s1531_s30  ;;  %v447_v31 = vrot.slane %v433_v26, %v1771_v23  ;;  %s1378_s30 = sshll.u32 %s1537_s28, 4  ;;  %s1379_s30 = int_to_ptr.vmem [resolvable:$false] %s1378_s30 }
 0x1c6   : > { %s1380_s29 = scalar_lea.vmem %s1379_s30, 512  ;;  %p1381_p7 = scmp.lt.s32.totalorder %s1812_s12, %s1379_s30 }
 0x1c7   : > { %v398_v32 = vcombine.low %v389_v30, %v397_v29  ;;  %v399_v33 = vcombine.high %v389_v30, %v397_v29  ;;  %v448_v35 = vcombine.high %v440_v28, %v1536_v34  ;;  %v449_v38 = vcombine.high %v447_v31, %v1536_v34  ;;  %p1382_p12 = scmp.lt.s32.totalorder %s1380_s29, %s1374_s26 }
 0x1c8   : > { %v455_v39 = vshrl.u32 %v440_v28, 16  ;;  %v471_v45 = vshrl.u32 %v447_v31, 16 }
 0x1c9   : > { %733 = vrot.lane.b32.xlu0 %v378_v21, %s1533_s7  ;;  %v406_v36 = vrot.slane %v398_v32, %v1771_v23  ;;  %v413_v37 = vrot.slane %v399_v33, %v1771_v23  ;;  %735 = vrot.lane.b32.xlu1 %v380_v27, %s1533_s7  ;;  %v463_v44 = vshrl.u32 %v448_v35, 16  ;;  %v479_v52 = vshrl.u32 %v449_v38, 16  ;;  %p1383_p0 = por %p1382_p12, %p1381_p7 }
 0x1cb   : > { %v414_v40 = vcombine.high %v406_v36, %v1536_v34  ;;  %v415_v41 = vcombine.high %v413_v37, %v1536_v34  ;;  %v452_v42 = vpack.i.b16 %v440_v28, %v406_v36  ;;  %v454_v43 = vshrl.u32 %v406_v36, 16  ;;  %p1384_p1 = pnand %p1383_p0, %p1377_p5 }
 0x1cc   : > { %v468_v46 = vpack.i.b16 %v447_v31, %v413_v37  ;;  %v470_v47 = vshrl.u32 %v413_v37, 16 }
 0x1cd   : > { %737 = vrot.lane.b32.xlu0 %v382_v20, %s1533_s7  ;;  %v456_v48 = vpack.i.b16 %v455_v39, %v454_v43  ;;  %v460_v49 = vpack.i.b16 %v448_v35, %v414_v40  ;;  %v462_v50 = vshrl.u32 %v414_v40, 16  ;;  %v476_v51 = vpack.i.b16 %v449_v38, %v415_v41 }
 0x1ce   : > { %v472_v53 = vpack.i.b16 %v471_v45, %v470_v47  ;;  %v478_v54 = vshrl.u32 %v415_v41, 16  ;;  %v482_v55 = vcombine.low %v452_v42, %v468_v46 }
 0x1cf   : > { %v464_v56 = vpack.i.b16 %v463_v44, %v462_v50  ;;  %v490_v57 = vcombine.low %v460_v49, %v476_v51 }
 0x1d0   : > { %v480_v58 = vpack.i.b16 %v479_v52, %v478_v54  ;;  %v507_v59 = vcombine.low %v456_v48, %v472_v53  ;;  %v489_v60 = vrot.slane %v482_v55, %v1768_v19 }
 0x1d1   : > { %v497_v61 = vrot.slane %v490_v57, %v1768_v19 }
 0x1d2   : > { %v515_v62 = vcombine.low %v464_v56, %v480_v58  ;;  %v514_v0 = vrot.slane %v507_v59, %v1768_v19 }
 0x1d3   : > { %v498_v63 = vcombine.low %v489_v60, %v497_v61 }
 0x1d4   : > { %v522_v1 = vrot.slane %v515_v62, %v1768_v19 }
 0x1d5   : > { %v505_v2 = vrot.slane %v498_v63, %v1771_v23 }
 0x1d6   : > { %v523_v3 = vcombine.low %v514_v0, %v522_v1 }
 0x1d7   : > { %v506_v4 = vcombine.high %v505_v2, %v1536_v34  ;;  %v536_v8 = vshrl.u32 %v505_v2, 16 }
 0x1d8   : > { %v530_v5 = vrot.slane %v523_v3, %v1771_v23 }
 0x1d9   : > { %v544_v12 = vshrl.u32 %v506_v4, 16 }
 0x1da   : > { %v531_v6 = vcombine.high %v530_v5, %v1536_v34  ;;  %v534_v7 = vpack.i.b16 %v530_v5, %v505_v2  ;;  %v537_v9 = vshrl.u32 %v530_v5, 16 }
 0x1dc   : > { %v538_v10 = vpack.i.b16 %v537_v9, %v536_v8  ;;  %v542_v11 = vpack.i.b16 %v531_v6, %v506_v4  ;;  %v545_v13 = vshrl.u32 %v531_v6, 16  ;;  %549 = vst.msk [vmem:[%s291_s8] sm:$0xf] %vm548_vm2, %v534_v7 }
 0x1de   : > { %v546_v14 = vpack.i.b16 %v545_v13, %v544_v12  ;;  %550 = vst.msk [vmem:[%s291_s8 + $0x4] sm:$0xf] %vm548_vm2, %v538_v10  ;;  %551 = vst.msk [vmem:[%s291_s8 + $0x8] sm:$0xf] %vm548_vm2, %v542_v11 }
 0x1e0   : > { %552 = vst.msk [vmem:[%s291_s8 + $0xc] sm:$0xf] %vm548_vm2, %v546_v14 }
 0x1e1   : > { %1387 = shalt.err (!%p1384_p1)
}
 0x1e2   : > { %s1388_s8 = scalar_lea.hbm %s1810_s17, 256  ;;  %s1392_s28 = scalar_lea.hbm %s1988_s3, 512 }
 0x1e3   : > { %p1389_p6 = scmp.ne.s32.totalorder %s1810_s17, %s1388_s8  ;;  %p1393_p4 = scmp.lt.u32.totalorder %s1810_s17, %s1988_s3 }
 0x1e4   : > { %p1394_p9 = scmp.lt.u32.totalorder %s1392_s28, %s1388_s8  ;;  %p1396_p8 = scmp.lt.u32.totalorder %s1388_s8, %s1810_s17 }
 0x1e5   : > { %p1390_p10 = pnand %p1389_p6, %p2005_p2 }
 0x1e6   : > { %p1395_p11 = por %p1394_p9, %p1393_p4 }
 0x1e7   : > { %p1391_p3 = pneg %p1390_p10 }
 0x1e8   : > { %p1397_p13 = por %p1396_p8, %p1395_p11 }
 0x1ea   : > { %p1398_p5 = pnand %p1397_p13, %p1391_p3 }
 0x1ec   : > { %1401 = shalt.err (!%p1398_p5)
}
 0x1ed   : > { %s1538_s26 = smov 4   ;;  %v554_v15 = vpop.permute.xlu1 %553  ;;  %s914_s25 = sand.u32 1, %s1602_s24  }
 0x1ee   : > { %1190 = dma.vmem_to_hbm [thread:$0]  (%p2005_p2), %s1812_s12, 256, %s1810_s17, %s910_s21, %s1533_s7, %s1533_s7, %s1538_s26   ;;  %v568_v24 = vrot.slane %v554_v15, %v1768_v19 }
 0x1ef   : > { %s298_s11 = scalar_lea.vmem [#allocation9], %s1793_s10  ;;  %s1884_s21 = scalar_lea.hbm %s1989_s4, %s1801_s13 }
 0x1f0   : > { %s951_s17 = sshll.u32 %s298_s11, 4  ;;  %s1891_s29 = scalar_lea.sflag [#allocation10], %s914_s25  ;;  %s1886_s17 = int_to_ptr.vmem [resolvable:$true] %s951_s17 }
 0x1f1   : > { %v732_v17 = vpop.permute.xlu1 %731  ;;  %s1402_s8 = scalar_lea.vmem %s1886_s17, 256  ;;  %s1539_s16 = smov [#allocation9]  }
 0x1f2   : > { %v746_v31 = vrot.slane %v732_v17, %v1768_v19  ;;  %p1403_p7 = scmp.ne.s32.totalorder %s1886_s17, %s1402_s8  ;;  %s1406_s15 = sshll.u32 %s1539_s16, 4  ;;  %s1407_s15 = int_to_ptr.vmem [resolvable:$false] %s1406_s15 }
 0x1f3   : > { %s1408_s28 = scalar_lea.vmem %s1407_s15, 512  ;;  %p1409_p1 = scmp.lt.s32.totalorder %s1886_s17, %s1407_s15 }
 0x1f4   : > { %p1404_p12 = pnand %p1403_p7, %p2005_p2  ;;  %p1410_p6 = scmp.lt.s32.totalorder %s1408_s28, %s1402_s8 }
 0x1f6   : > { %p1405_p0 = pneg %p1404_p12  ;;  %p1411_p10 = por %p1410_p6, %p1409_p1 }
 0x1f8   : > { %p1412_p3 = pnand %p1411_p10, %p1405_p0 }
 0x233   : > { %v556_v16 = vpop.permute.xlu0 %555 }
 0x234   : > { %v602_v20 = vrot.slane %v556_v16, %v1768_v19 }
 0x237   : > { %v560_v18 = vpop.permute.xlu0 %559  ;;  %v558_v21 = vpop.permute.xlu1 %557 }
 0x238   : > { %v610_v22 = vrot.slane %v560_v18, %v1768_v19  ;;  %v576_v25 = vrot.slane %v558_v21, %v1768_v19 }
 0x23a   : > { %v611_v26 = vcombine.low %v602_v20, %v610_v22  ;;  %v612_v27 = vcombine.high %v602_v20, %v610_v22  ;;  %v577_v28 = vcombine.low %v568_v24, %v576_v25  ;;  %v578_v29 = vcombine.high %v568_v24, %v576_v25 }
 0x23b   : > { %v734_v30 = vpop.permute.xlu0 %733  ;;  %v736_v35 = vpop.permute.xlu1 %735 }
 0x23c   : > { %v619_v32 = vrot.slane %v611_v26, %v1771_v23  ;;  %v626_v33 = vrot.slane %v612_v27, %v1771_v23  ;;  %v585_v36 = vrot.slane %v577_v28, %v1771_v23  ;;  %v592_v37 = vrot.slane %v578_v29, %v1771_v23 }
 0x23d   : > { %v754_v38 = vrot.slane %v736_v35, %v1768_v19  ;;  %v780_v39 = vrot.slane %v734_v30, %v1768_v19 }
 0x23e   : > { %v627_v40 = vcombine.high %v619_v32, %v1536_v34  ;;  %v628_v41 = vcombine.high %v626_v33, %v1536_v34  ;;  %v634_v42 = vshrl.u32 %v619_v32, 16  ;;  %v650_v43 = vshrl.u32 %v626_v33, 16 }
 0x23f   : > { %v593_v44 = vcombine.high %v585_v36, %v1536_v34  ;;  %v594_v45 = vcombine.high %v592_v37, %v1536_v34  ;;  %v633_v46 = vshrl.u32 %v585_v36, 16  ;;  %v649_v47 = vshrl.u32 %v592_v37, 16  ;;  %v738_v52 = vpop.permute.xlu0 %737 }
 0x240   : > { %v631_v48 = vpack.i.b16 %v619_v32, %v585_v36  ;;  %v642_v49 = vshrl.u32 %v627_v40, 16  ;;  %v647_v50 = vpack.i.b16 %v626_v33, %v592_v37  ;;  %v658_v51 = vshrl.u32 %v628_v41, 16 }
 0x241   : > { %v641_v53 = vshrl.u32 %v593_v44, 16  ;;  %v657_v54 = vshrl.u32 %v594_v45, 16  ;;  %v635_v55 = vpack.i.b16 %v634_v42, %v633_v46  ;;  %v639_v56 = vpack.i.b16 %v627_v40, %v593_v44 }
 0x242   : > { %v651_v57 = vpack.i.b16 %v650_v43, %v649_v47  ;;  %v655_v58 = vpack.i.b16 %v628_v41, %v594_v45  ;;  %v661_v59 = vcombine.low %v631_v48, %v647_v50  ;;  %v755_v60 = vcombine.low %v746_v31, %v754_v38 }
 0x243   : > { %v643_v61 = vpack.i.b16 %v642_v49, %v641_v53  ;;  %v659_v62 = vpack.i.b16 %v658_v51, %v657_v54  ;;  %v756_v63 = vcombine.high %v746_v31, %v754_v38  ;;  %v788_v0 = vrot.slane %v738_v52, %v1768_v19 }
 0x244   : > { %v669_v1 = vcombine.low %v639_v56, %v655_v58  ;;  %v686_v2 = vcombine.low %v635_v55, %v651_v57  ;;  %v763_v3 = vrot.slane %v755_v60, %v1771_v23  ;;  %v668_v8 = vrot.slane %v661_v59, %v1768_v19 }
 0x245   : > { %v694_v4 = vcombine.low %v643_v61, %v659_v62  ;;  %v770_v5 = vrot.slane %v756_v63, %v1771_v23  ;;  %v789_v6 = vcombine.low %v780_v39, %v788_v0  ;;  %v790_v7 = vcombine.high %v780_v39, %v788_v0 }
 0x246   : > { %v676_v9 = vrot.slane %v669_v1, %v1768_v19  ;;  %v693_v10 = vrot.slane %v686_v2, %v1768_v19  ;;  %v771_v11 = vcombine.high %v763_v3, %v1536_v34  ;;  %v811_v14 = vshrl.u32 %v763_v3, 16 }
 0x247   : > { %v701_v12 = vrot.slane %v694_v4, %v1768_v19  ;;  %v772_v13 = vcombine.high %v770_v5, %v1536_v34  ;;  %v797_v15 = vrot.slane %v789_v6, %v1771_v23  ;;  %v827_v18 = vshrl.u32 %v770_v5, 16 }
 0x248   : > { %v677_v16 = vcombine.low %v668_v8, %v676_v9  ;;  %v819_v17 = vshrl.u32 %v771_v11, 16  ;;  %v804_v20 = vrot.slane %v790_v7, %v1771_v23 }
 0x249   : > { %v702_v21 = vcombine.low %v693_v10, %v701_v12  ;;  %v835_v22 = vshrl.u32 %v772_v13, 16  ;;  %v805_v24 = vcombine.high %v797_v15, %v1536_v34  ;;  %v809_v25 = vpack.i.b16 %v797_v15, %v763_v3 }
 0x24a   : > { %v684_v26 = vrot.slane %v677_v16, %v1771_v23  ;;  %v806_v27 = vcombine.high %v804_v20, %v1536_v34  ;;  %v812_v28 = vshrl.u32 %v797_v15, 16  ;;  %v825_v29 = vpack.i.b16 %v804_v20, %v770_v5 }
 0x24b   : > { %v709_v30 = vrot.slane %v702_v21, %v1771_v23  ;;  %v817_v31 = vpack.i.b16 %v805_v24, %v771_v11  ;;  %v820_v32 = vshrl.u32 %v805_v24, 16  ;;  %v828_v33 = vshrl.u32 %v804_v20, 16 }
 0x24c   : > { %v685_v35 = vcombine.high %v684_v26, %v1536_v34  ;;  %v715_v36 = vshrl.u32 %v684_v26, 16  ;;  %v813_v37 = vpack.i.b16 %v812_v28, %v811_v14  ;;  %v833_v38 = vpack.i.b16 %v806_v27, %v772_v13 }
 0x24d   : > { %v710_v39 = vcombine.high %v709_v30, %v1536_v34  ;;  %v713_v40 = vpack.i.b16 %v709_v30, %v684_v26  ;;  %v716_v41 = vshrl.u32 %v709_v30, 16  ;;  %v821_v42 = vpack.i.b16 %v820_v32, %v819_v17 }
 0x24e   : > { %v723_v43 = vshrl.u32 %v685_v35, 16  ;;  %v829_v44 = vpack.i.b16 %v828_v33, %v827_v18  ;;  %v836_v45 = vshrl.u32 %v806_v27, 16  ;;  %v839_v46 = vcombine.low %v809_v25, %v825_v29 }
 0x24f   : > { %v717_v47 = vpack.i.b16 %v716_v41, %v715_v36  ;;  %v721_v48 = vpack.i.b16 %v710_v39, %v685_v35  ;;  %v724_v49 = vshrl.u32 %v710_v39, 16  ;;  %v847_v50 = vcombine.low %v817_v31, %v833_v38  ;;  %727 = vst.msk [vmem:[%s298_s11] sm:$0xf] %vm548_vm2, %v713_v40 }
 0x250   : > { %v837_v51 = vpack.i.b16 %v836_v45, %v835_v22  ;;  %v864_v52 = vcombine.low %v813_v37, %v829_v44  ;;  %v846_v54 = vrot.slane %v839_v46, %v1768_v19 }
 0x251   : > { %v725_v53 = vpack.i.b16 %v724_v49, %v723_v43  ;;  %v854_v55 = vrot.slane %v847_v50, %v1768_v19  ;;  %728 = vst.msk [vmem:[%s298_s11 + $0x4] sm:$0xf] %vm548_vm2, %v717_v47  ;;  %729 = vst.msk [vmem:[%s298_s11 + $0x8] sm:$0xf] %vm548_vm2, %v721_v48 }
 0x252   : > { %v872_v56 = vcombine.low %v821_v42, %v837_v51  ;;  %v871_v58 = vrot.slane %v864_v52, %v1768_v19 }
 0x253   : > { %v855_v57 = vcombine.low %v846_v54, %v854_v55  ;;  %730 = vst.msk [vmem:[%s298_s11 + $0xc] sm:$0xf] %vm548_vm2, %v725_v53 }
 0x254   : > { %v879_v59 = vrot.slane %v872_v56, %v1768_v19 }
 0x255   : > { %1415 = shalt.err (!%p1412_p3)
}
 0x256   : > { %s1416_s30 = scalar_lea.hbm %s1884_s21, 256  ;;  %s1420_s24 = scalar_lea.hbm %s1989_s4, 512 }
 0x257   : > { %p1417_p4 = scmp.ne.s32.totalorder %s1884_s21, %s1416_s30  ;;  %p1421_p8 = scmp.lt.u32.totalorder %s1884_s21, %s1989_s4 }
 0x258   : > { %p1422_p13 = scmp.lt.u32.totalorder %s1420_s24, %s1416_s30  ;;  %p1424_p7 = scmp.lt.u32.totalorder %s1416_s30, %s1884_s21 }
 0x259   : > { %p1418_p9 = pnand %p1417_p4, %p2005_p2 }
 0x25a   : > { %p1423_p5 = por %p1422_p13, %p1421_p8 }
 0x25b   : > { %p1419_p11 = pneg %p1418_p9 }
 0x25c   : > { %p1425_p12 = por %p1424_p7, %p1423_p5 }
 0x25e   : > { %p1426_p0 = pnand %p1425_p12, %p1419_p11 }
 0x260   : > { %1429 = shalt.err (!%p1426_p0)
}
 0x261   : > { %1191 = dma.vmem_to_hbm [thread:$0]  (%p2005_p2), %s1886_s17, 256, %s1884_s21, %s1891_s29, %s1533_s7, %s1533_s7, %s1538_s26   ;;  %v862_v19 = vrot.slane %v855_v57, %v1771_v23  ;;  %v880_v60 = vcombine.low %v871_v58, %v879_v59 }
 0x262   : > { %s305_s8 = scalar_lea.vmem [#allocation11], %s1793_s10  ;;  %s1930_s28 = scalar_lea.hbm %s1990_s5, %s1801_s13 }
 0x263   : > { %v863_v61 = vcombine.high %v862_v19, %v1536_v34  ;;  %v887_v62 = vrot.slane %v880_v60, %v1771_v23  ;;  %v893_v1 = vshrl.u32 %v862_v19, 16  ;;  %s968_s15 = sshll.u32 %s305_s8, 4  ;;  %s1540_s30 = smov [#allocation11]   ;;  %s1932_s15 = int_to_ptr.vmem [resolvable:$true] %s968_s15 }
 0x264   : > { %s1430_s10 = scalar_lea.vmem %s1932_s15, 256  ;;  %s1434_s25 = sshll.u32 %s1540_s30, 4  ;;  %s1435_s25 = int_to_ptr.vmem [resolvable:$false] %s1434_s25 }
 0x265   : > { %v888_v63 = vcombine.high %v887_v62, %v1536_v34  ;;  %v891_v0 = vpack.i.b16 %v887_v62, %v862_v19  ;;  %v894_v2 = vshrl.u32 %v887_v62, 16  ;;  %v901_v5 = vshrl.u32 %v863_v61, 16  ;;  %p1431_p1 = scmp.ne.s32.totalorder %s1932_s15, %s1430_s10  ;;  %s1436_s11 = scalar_lea.vmem %s1435_s25, 512 }
 0x266   : > { %p1437_p3 = scmp.lt.s32.totalorder %s1932_s15, %s1435_s25  ;;  %p1438_p4 = scmp.lt.s32.totalorder %s1436_s11, %s1430_s10 }
 0x267   : > { %v895_v3 = vpack.i.b16 %v894_v2, %v893_v1  ;;  %v899_v4 = vpack.i.b16 %v888_v63, %v863_v61  ;;  %v902_v6 = vshrl.u32 %v888_v63, 16  ;;  %905 = vst.msk [vmem:[%s305_s8] sm:$0xf] %vm548_vm2, %v891_v0  ;;  %p1432_p6 = pnand %p1431_p1, %p2005_p2 }
 0x268   : > { %p1439_p9 = por %p1438_p4, %p1437_p3 }
 0x269   : > { %v903_v7 = vpack.i.b16 %v902_v6, %v901_v5  ;;  %906 = vst.msk [vmem:[%s305_s8 + $0x4] sm:$0xf] %vm548_vm2, %v895_v3  ;;  %907 = vst.msk [vmem:[%s305_s8 + $0x8] sm:$0xf] %vm548_vm2, %v899_v4  ;;  %p1433_p10 = pneg %p1432_p6 }
 0x26b   : > { %908 = vst.msk [vmem:[%s305_s8 + $0xc] sm:$0xf] %vm548_vm2, %v903_v7  ;;  %p1440_p11 = pnand %p1439_p9, %p1433_p10 }
 0x26d   : > { %1443 = shalt.err (!%p1440_p11)
}
 0x26e   : > { %s1444_s13 = scalar_lea.hbm %s1930_s28, 256  ;;  %s1448_s16 = scalar_lea.hbm %s1990_s5, 512 }
 0x26f   : > { %p1445_p8 = scmp.ne.s32.totalorder %s1930_s28, %s1444_s13  ;;  %p1449_p7 = scmp.lt.u32.totalorder %s1930_s28, %s1990_s5 }
 0x270   : > { %p1450_p12 = scmp.lt.u32.totalorder %s1448_s16, %s1444_s13  ;;  %p1452_p1 = scmp.lt.u32.totalorder %s1444_s13, %s1930_s28 }
 0x271   : > { %p1446_p13 = pnand %p1445_p8, %p2005_p2 }
 0x272   : > { %p1451_p0 = por %p1450_p12, %p1449_p7 }
 0x273   : > { %p1447_p5 = pneg %p1446_p13 }
 0x274   : > { %p1453_p6 = por %p1452_p1, %p1451_p0 }
 0x276   : > { %p1454_p10 = pnand %p1453_p6, %p1447_p5 }
 0x278   : > { %1457 = shalt.err (!%p1454_p10)
}
 0x279   : > { %1192 = dma.vmem_to_hbm [thread:$0]  (%p2005_p2), %s1932_s15, 256, %s1930_s28, %s1891_s29, %s1533_s7, %s1533_s7, %s1538_s26  }
 0x27a PF: > { %s983_s21 = sand.u32 1, %s1500_s18   ;;  %p2006_p3 = scmp.ne.s32.totalorder %s1996_s27, 0 }
 0x27b   : > { %p2007_p4 = scmp.ge.s32.totalorder %s1520_s23, 2  ;;  %s984_s10 = scalar_lea.sflag [#allocation4], %s983_s21 }
 0x27d   : > { %p1208_p9 = pnand %p2007_p4, %p2006_p3 }
 0x27f   : > { %1491 = dma.done.wait (!%p1208_p9), %s984_s10, 256  }
 0x280   : > { %1493 = vsyncadd (!%p1208_p9), %s984_s10, 4294967040  ;;  %s2008_s6 = sadd.s32 4294967294, %s1520_s23  }
 0x281   : > { %s992_s30 = sand.u32 1, %s2008_s6  }
 0x282   : > { %s993_s25 = scalar_lea.sflag [#allocation10], %s992_s30 }
 0x283   : > { %1495 = dma.done.wait (!%p1208_p9), %s993_s25, 512  }
 0x284   : > { %1497 = vsyncadd (!%p1208_p9), %s993_s25, 4294966784  ;;  %s26_s23 = sadd.s32 1, %s1520_s23   ;;  %s2009_s18 = smov %s1504_s19 }
 0x285   : > { %p23_p2 = scmp.ge.s32.totalorder %s26_s23, 4   ;;  %s2010_s19 = smov %s1508_s20 }
 0x286   : > { %s2011_s20 = smov %s1712_s14  ;;  %s2012_s21 = smov %s1516_s22 }
 0x287   : > { %s2013_s22 = smov %s2015_s9  ;;  %25 = sbr.rel (!%p23_p2) target bundleno = 9 (0x9), region = 117 }
 0x28e   :  { %1007 = vsyncpa [#allocation3], 1 }
 0x28f   :  { %1009 = vsyncpa [#allocation3 + $0x1], 1 }
 0x290   :  { %1010 = vsyncpa [#allocation6], 1 }
 0x291   :  { %1011 = vsyncpa [#allocation4], 1 }
 0x292   :  { %1013 = vsyncpa [#allocation4 + $0x1], 1 }
 0x293   :  { %1014 = vsyncpa [#allocation10], 1 }
 0x294   :  { %1016 = vsyncpa [#allocation10 + $0x1], 1 }

</bundles_post_ra>
